<compile_context>
chip_gen: v5e
topology: v5e:2x2
jax: 0.10.0
libtpu: 0.0.40
codegen_flags: <defaults>
</compile_context>

<pallas_src>
import functools

import jax
import jax.numpy as jnp
from jax.experimental import pallas as pl
from jax.experimental.pallas import tpu as pltpu


def _round_up(x, m):
    return ((x + m - 1) // m) * m


def _make_mlp_kernel(out_bias_val):
    """Kernel factory: bakes the frozen output-layer bias in as a constant."""

    def kernel(x_ref, w1_ref, b1_ref, w2_ref, o_ref):
        # Hidden layer: one MXU push, f32 accumulate, f32 elementwise (v5e-safe).
        h = jnp.dot(x_ref[...], w1_ref[...], preferred_element_type=jnp.float32)
        h = jax.nn.sigmoid(h + b1_ref[...])          # b1 is (1, hidden_p) f32, broadcasts

        # Output layer with the frozen bias folded in as a literal.
        y = jnp.dot(h.astype(w2_ref.dtype), w2_ref[...],
                    preferred_element_type=jnp.float32)
        o_ref[...] = jax.nn.sigmoid(y + out_bias_val).astype(o_ref.dtype)

    return kernel


def prepare_weights(w1, b1, w2, *, compute_dtype=jnp.bfloat16):
    """One-time weight preparation. Call ONCE at module init, not per forward.

    w1: [in1+in2, hidden], b1: [1, hidden] (or [hidden]), w2: [hidden, out]
    (pre-transposed vs torch, so y = x @ W + b).

    Returns lane-dense (hidden, out padded to multiples of 128), dtype-cast
    weights ready to feed straight into `mlp_forward`, plus the true out_size.
    """
    k_total, hidden = w1.shape
    out_size = w2.shape[1]
    hidden_p = _round_up(hidden, 128)
    out_p = _round_up(out_size, 128)

    w1_p = jnp.pad(w1, ((0, 0), (0, hidden_p - hidden))).astype(compute_dtype)
    b1_p = jnp.pad(b1.reshape(1, hidden).astype(jnp.float32),
                   ((0, 0), (0, hidden_p - hidden)))
    # CORRECTNESS INVARIANT: padded hidden lanes evaluate sigmoid(0) = 0.5;
    # they cancel only because W2's padded ROWS are exactly zero below.
    # Do not replace this zero-pad with an unpadded / reused W2.
    w2_p = jnp.pad(w2, ((0, hidden_p - hidden),
                        (0, out_p - out_size))).astype(compute_dtype)
    return w1_p, b1_p, w2_p, out_size


@functools.partial(
    jax.jit,
    static_argnames=("out_size", "out_bias_val", "compute_dtype",
                     "batch_tile", "slice_output"))
def mlp_forward(in1, in2, w1_p, b1_p, w2_p, *,
                out_size,
                out_bias_val=-2.0,
                compute_dtype=jnp.bfloat16,
                batch_tile=1024,
                slice_output=True):
    """Forward pass. Weights must come from `prepare_weights` (already padded/cast)."""
    batch = in1.shape[0]
    k_total, hidden_p = w1_p.shape
    out_p = w2_p.shape[1]

    # ---- input prep (the only per-call XLA work): concat + cast fuse. -------
    x = jnp.concatenate([in1, in2], axis=1).astype(compute_dtype)

    # ---- batch tiling --------------------------------------------------------
    # Small batches: a single tile. Larger batches: >= 2 tiles (both v7x TCs
    # get work), default tile 1024, and zero-pad the batch up to a tile
    # multiple instead of collapsing to one giant tile.
    if batch <= 512:
        tile = batch
        padded_batch = batch
    else:
        tile = min(batch_tile, _round_up((batch + 1) // 2, 8))
        padded_batch = _round_up(batch, tile)
    if padded_batch != batch:
        x = jnp.pad(x, ((0, padded_batch - batch), (0, 0)))
    grid = (padded_batch // tile,)

    # Store in the compute dtype (bf16 fast path halves output HBM writeback).
    out_dtype = jnp.float32 if compute_dtype == jnp.float32 else compute_dtype

    kernel = _make_mlp_kernel(float(out_bias_val))

    out_padded = pl.pallas_call(
        kernel,
        out_shape=jax.ShapeDtypeStruct((padded_batch, out_p), out_dtype),
        grid=grid,
        in_specs=[
            pl.BlockSpec((tile, k_total), lambda i: (i, 0)),       # x tile
            pl.BlockSpec((k_total, hidden_p), lambda i: (0, 0)),   # W1 (resident)
            pl.BlockSpec((1, hidden_p), lambda i: (0, 0)),         # b1 (resident)
            pl.BlockSpec((hidden_p, out_p), lambda i: (0, 0)),     # W2 (resident)
        ],
        out_specs=pl.BlockSpec((tile, out_p), lambda i: (i, 0)),
        compiler_params=pltpu.CompilerParams(
            dimension_semantics=("parallel",)),    # megacore-shard batch on v7x
    )(x, w1_p, b1_p, w2_p)

    if slice_output:
        return out_padded[:batch, :out_size]
    # Caller slices [:batch, :out_size] where it can fuse with the consumer.
    return out_padded


def _reference(in1, in2, w1, b1, w2, out_bias_val):
    x = jnp.concatenate([in1, in2], axis=1)
    h = jax.nn.sigmoid(x @ w1 + b1)
    return jax.nn.sigmoid(h @ w2 + out_bias_val)


if __name__ == "__main__":
    # Sizes implied by the module constructor.
    batch = 2
    in1_size = 8
    in2_size = 8
    hidden_size = 32
    output_size = 16
    wrange = (-0.9, 0.9)
    output_layer_bias_val = -2.0

    key = jax.random.PRNGKey(0)
    k_in1, k_in2, k_w1, k_b1, k_w2 = jax.random.split(key, 5)

    # init_weights(): hidden weight & bias ~ U(wrange); output weight ~ U(wrange),
    # output bias frozen at -2.0 (static constant baked into the kernel).
    w1 = jax.random.uniform(k_w1, (in1_size + in2_size, hidden_size),
                            jnp.float32, wrange[0], wrange[1])
    b1 = jax.random.uniform(k_b1, (1, hidden_size),
                            jnp.float32, wrange[0], wrange[1])
    w2 = jax.random.uniform(k_w2, (hidden_size, output_size),
                            jnp.float32, wrange[0], wrange[1])

    in1 = jax.random.normal(k_in1, (batch, in1_size), jnp.float32)
    in2 = jax.random.normal(k_in2, (batch, in2_size), jnp.float32)

    ref = _reference(in1, in2, w1, b1, w2, output_layer_bias_val)

    # One-time weight prep (hoisted out of the per-call forward).
    w1_f32, b1_f32, w2_f32, out_size = prepare_weights(
        w1, b1, w2, compute_dtype=jnp.float32)
    w1_bf, b1_bf, w2_bf, _ = prepare_weights(
        w1, b1, w2, compute_dtype=jnp.bfloat16)

    # f32 compute path: exact-semantics check at tight tolerance.
    out_f32 = mlp_forward(in1, in2, w1_f32, b1_f32, w2_f32,
                          out_size=out_size,
                          out_bias_val=output_layer_bias_val,
                          compute_dtype=jnp.float32)
    jax.block_until_ready(out_f32)
    assert jnp.allclose(out_f32, ref, atol=1e-5), "f32 kernel mismatch vs reference"

    # bf16 compute path (MXU fast path, bf16 output): looser tolerance.
    out_bf16 = mlp_forward(in1, in2, w1_bf, b1_bf, w2_bf,
                           out_size=out_size,
                           out_bias_val=output_layer_bias_val,
                           compute_dtype=jnp.bfloat16)
    jax.block_until_ready(out_bf16)
    assert jnp.allclose(out_bf16.astype(jnp.float32), ref, atol=5e-2), \
        "bf16 kernel mismatch vs reference"

    # Large, non-tile-multiple batch: exercises zero-pad remainder path and a
    # >=2-step parallel grid (both v7x TensorCores active).
    kb1, kb2 = jax.random.split(jax.random.PRNGKey(1))
    big_batch = 1027
    big1 = jax.random.normal(kb1, (big_batch, in1_size), jnp.float32)
    big2 = jax.random.normal(kb2, (big_batch, in2_size), jnp.float32)
    out_big = mlp_forward(big1, big2, w1_bf, b1_bf, w2_bf,
                          out_size=out_size,
                          out_bias_val=output_layer_bias_val,
                          compute_dtype=jnp.bfloat16)
    jax.block_until_ready(out_big)
    ref_big = _reference(big1, big2, w1, b1, w2, output_layer_bias_val)
    assert out_big.shape == (big_batch, output_size)
    assert jnp.allclose(out_big.astype(jnp.float32), ref_big, atol=5e-2), \
        "batched kernel mismatch"

    # TODO(synk): the module's record_data bookkeeping (layer_inputs/outputs,
    # gradient hooks) is training-time introspection, not part of the forward
    # value, and is intentionally not reproduced in the kernel.
    print("KERNEL_OK")
</pallas_src>

<mosaic_0001>
module attributes {stable_mosaic.version = 11 : i64} {
  func.func @kernel(%arg0: i32, %arg1: memref<2x16xf32, #tpu.memory_space<vmem>>, %arg2: memref<16x128xf32, #tpu.memory_space<vmem>>, %arg3: memref<1x128xf32, #tpu.memory_space<vmem>>, %arg4: memref<128x128xf32, #tpu.memory_space<vmem>>, %arg5: memref<2x128xf32, #tpu.memory_space<vmem>>) attributes {dimension_semantics = [#tpu.dimension_semantics<parallel>], iteration_bounds = array<i64: 1>, scalar_prefetch = 0 : i64, scratch_operands = 0 : i64, tpu.core_type = #tpu.core_type<tc>, window_params = [{transform_indices = @transform_0, window_bounds = array<i64: 2, 16>}, {pipeline_mode = #tpu.pipeline_mode<synchronous>, transform_indices = @transform_1, window_bounds = array<i64: 16, 128>}, {pipeline_mode = #tpu.pipeline_mode<synchronous>, transform_indices = @transform_2, window_bounds = array<i64: 1, 128>}, {pipeline_mode = #tpu.pipeline_mode<synchronous>, transform_indices = @transform_3, window_bounds = array<i64: 128, 128>}, {transform_indices = @transform_4, window_bounds = array<i64: 2, 128>}]} {
    %c0 = arith.constant 0 : index
    %c0_0 = arith.constant 0 : index
    %0 = vector.load %arg1[%c0, %c0_0] : memref<2x16xf32, #tpu.memory_space<vmem>>, vector<2x16xf32>
    %c0_1 = arith.constant 0 : index
    %c0_2 = arith.constant 0 : index
    %1 = vector.load %arg2[%c0_1, %c0_2] : memref<16x128xf32, #tpu.memory_space<vmem>>, vector<16x128xf32>
    %cst = arith.constant dense<0.000000e+00> : vector<2x128xf32>
    %2 = tpu.matmul %0, %1, %cst {dimension_numbers = #tpu.dot_dimension_numbers<[1], [0], [0], [1], [0, 0, 1, 1], [], []>} : vector<2x16xf32>, vector<16x128xf32>, vector<2x128xf32> -> vector<2x128xf32>
    %c0_3 = arith.constant 0 : index
    %c0_4 = arith.constant 0 : index
    %3 = vector.load %arg3[%c0_3, %c0_4] : memref<1x128xf32, #tpu.memory_space<vmem>>, vector<1x128xf32>
    %4 = vector.broadcast %3 : vector<1x128xf32> to vector<2x128xf32>
    %5 = arith.addf %2, %4 : vector<2x128xf32>
    %6 = arith.negf %5 : vector<2x128xf32>
    %7 = math.exp %6 : vector<2x128xf32>
    %cst_5 = arith.constant 1.000000e+00 : f32
    %8 = vector.broadcast %cst_5 : f32 to vector<2x128xf32>
    %9 = arith.addf %8, %7 : vector<2x128xf32>
    %10 = arith.divf %8, %9 : vector<2x128xf32>
    %c0_6 = arith.constant 0 : index
    %c0_7 = arith.constant 0 : index
    %11 = vector.load %arg4[%c0_6, %c0_7] : memref<128x128xf32, #tpu.memory_space<vmem>>, vector<128x128xf32>
    %cst_8 = arith.constant dense<0.000000e+00> : vector<2x128xf32>
    %12 = tpu.matmul %10, %11, %cst_8 {dimension_numbers = #tpu.dot_dimension_numbers<[1], [0], [0], [1], [0, 0, 1, 1], [], []>} : vector<2x128xf32>, vector<128x128xf32>, vector<2x128xf32> -> vector<2x128xf32>
    %cst_9 = arith.constant -2.000000e+00 : f32
    %13 = vector.broadcast %cst_9 : f32 to vector<2x128xf32>
    %14 = arith.addf %12, %13 : vector<2x128xf32>
    %15 = arith.negf %14 : vector<2x128xf32>
    %16 = math.exp %15 : vector<2x128xf32>
    %cst_10 = arith.constant 1.000000e+00 : f32
    %17 = vector.broadcast %cst_10 : f32 to vector<2x128xf32>
    %18 = arith.addf %17, %16 : vector<2x128xf32>
    %19 = arith.divf %17, %18 : vector<2x128xf32>
    %c0_11 = arith.constant 0 : index
    %c0_12 = arith.constant 0 : index
    %20 = vector.load %arg5[%c0_11, %c0_12] : memref<2x128xf32, #tpu.memory_space<vmem>>, vector<2x128xf32>
    tpu.vector_store %arg5[%c0_11, %c0_12], %19 {strides = array<i32>} : memref<2x128xf32, #tpu.memory_space<vmem>>, vector<2x128xf32>,
    return
  }
  func.func @transform_0(%arg0: i32) -> (i32, i32) {
    %c0_i32 = arith.constant 0 : i32
    %c0_i32_0 = arith.constant 0 : i32
    return %arg0, %c0_i32 : i32, i32
  }
  func.func @transform_1(%arg0: i32) -> (i32, i32) {
    %c0_i32 = arith.constant 0 : i32
    %c0_i32_0 = arith.constant 0 : i32
    %c0_i32_1 = arith.constant 0 : i32
    return %c0_i32, %c0_i32_0 : i32, i32
  }
  func.func @transform_2(%arg0: i32) -> (i32, i32) {
    %c0_i32 = arith.constant 0 : i32
    %c0_i32_0 = arith.constant 0 : i32
    %c0_i32_1 = arith.constant 0 : i32
    return %c0_i32, %c0_i32_0 : i32, i32
  }
  func.func @transform_3(%arg0: i32) -> (i32, i32) {
    %c0_i32 = arith.constant 0 : i32
    %c0_i32_0 = arith.constant 0 : i32
    %c0_i32_1 = arith.constant 0 : i32
    return %c0_i32, %c0_i32_0 : i32, i32
  }
  func.func @transform_4(%arg0: i32) -> (i32, i32) {
    %c0_i32 = arith.constant 0 : i32
    %c0_i32_0 = arith.constant 0 : i32
    return %arg0, %c0_i32 : i32, i32
  }
}

</mosaic_0001>

<bundles_post_ra>
// kernel: mlp_forward.1
= control target key start
LH: loop header
LB: loop body
LE: loop exit
PB: predicated region body
PF: predicated region fallthrough
CT: control target
= control target key end

     0   :  { %9 = vsyncpa [#allocation3], 0  ;;  %s314_s0 = inlined_call_operand.vmem [shape: f32[2,16], index: 0, kind: input, shape index: {}]   ;;  %s315_s1 = inlined_call_operand.hbm [shape: f32[16,128], index: 1, kind: input, shape index: {}]   ;;  %s316_s2 = inlined_call_operand.vmem [shape: f32[1,128], index: 2, kind: input, shape index: {}]   ;;  %s317_s3 = inlined_call_operand.hbm [shape: f32[128,128], index: 3, kind: input, shape index: {}]   ;;  %s318_s4 = inlined_call_operand.hbm [shape: f32[2,128], index: 4, kind: output, shape index: {}]  }
   0x1   :  { %10 = vsyncpa [#allocation6], 0 }
   0x2   :  { %11 = vsyncpa [#allocation4], 0  ;;  %s18_s17 = sshll.u32 %s315_s1, 4  ;;  %s269_s18 = smov [#allocation2]   ;;  %s19_s17 = int_to_ptr.hbm [resolvable:$true] %s18_s17 }
   0x3   :  { %s20_s19 = sshll.u32 %s269_s18, 4  ;;  %s33_s22 = sshll.u32 %s317_s3, 4  ;;  %s21_s19 = int_to_ptr.vmem [resolvable:$true] %s20_s19  ;;  %s34_s22 = int_to_ptr.hbm [resolvable:$true] %s33_s22 }
   0x4   :  { %s270_s23 = smov 128   ;;  %s271_s24 = smov 8  }
   0x5   :  { %26 = dma.hbm_to_vmem [thread:$0]  %s19_s17, 256, %s21_s19, [#allocation3], %s270_s23, %s270_s23, %s271_s24  }
   0x6   :  { %s272_s25 = smov [#allocation5]  }
   0x7   :  { %s35_s26 = sshll.u32 %s272_s25, 4  ;;  %s36_s26 = int_to_ptr.vmem [resolvable:$true] %s35_s26 }
   0x8   :  { %41 = dma.hbm_to_vmem [thread:$0]  %s34_s22, 2048, %s36_s26, [#allocation6], %s270_s23, %s270_s23, %s271_s24  }
   0x9   :  { %263 = dma.done.wait [#allocation3], 256  }
   0xa   :  { %264 = vsyncadd [#allocation3], 4294967040 }
   0xb   :  { %265 = dma.done.wait [#allocation6], 2048  }
   0xc   :  { %266 = vsyncadd [#allocation6], 4294965248  ;;  %v52_v0 = vld [vmem:[#allocation2 + $0x8] sm:$0xff]  ;;  %v51_v1 = vld [vmem:[#allocation2] sm:$0xff]  ;;  %vm57_vm0 = vcmask 130048   ;;  %s163_s5 = sshll.u32 %s318_s4, 4  ;;  %s164_s5 = int_to_ptr.hbm [resolvable:$true] %s163_s5 }
   0xd   :  { %75 = vmatpush.msra.mxu0 %v52_v0  ;;  %v50_v2 = vld [vmem:[%s314_s0] sm:$0x3]  ;;  %v115_v3 = vld [vmem:[#allocation5 + $0x78] sm:$0xff]  ;;  %v113_v5 = vld [vmem:[#allocation5 + $0x68] sm:$0xff] }
   0xe   :  { %116 = vmatpush.msra.mxu1 %v115_v3  ;;  %v114_v4 = vld [vmem:[#allocation5 + $0x70] sm:$0xff]  ;;  %v112_v6 = vld [vmem:[#allocation5 + $0x60] sm:$0xff]  ;;  %v111_v7 = vld [vmem:[#allocation5 + $0x58] sm:$0xff] }
   0xf   :  { %76 = vmatpush.msra.mxu0 %v51_v1  ;;  %v110_v8 = vld [vmem:[#allocation5 + $0x50] sm:$0xff]  ;;  %v109_v9 = vld [vmem:[#allocation5 + $0x48] sm:$0xff]  ;;  %v108_v10 = vld [vmem:[#allocation5 + $0x40] sm:$0xff] }
  0x10   :  { %174 = vmatmul.msk.f32.vlgmr.msra.gmra.mxu0 %vm57_vm0, %v50_v2  ;;  %117 = vmatpush.msra.mxu1 %v114_v4  ;;  %v107_v11 = vld [vmem:[#allocation5 + $0x38] sm:$0xff]  ;;  %v106_v12 = vld [vmem:[#allocation5 + $0x30] sm:$0xff]  ;;  %v105_v13 = vld [vmem:[#allocation5 + $0x28] sm:$0xff] }
  0x11   :  { %v104_v14 = vld [vmem:[#allocation5 + $0x20] sm:$0xff]  ;;  %v103_v15 = vld [vmem:[#allocation5 + $0x18] sm:$0xff]  ;;  %v102_v16 = vld [vmem:[#allocation5 + $0x10] sm:$0xff] }
  0x12   :  { %118 = vmatpush.msra.mxu1 %v113_v5  ;;  %v101_v17 = vld [vmem:[#allocation5 + $0x8] sm:$0xff]  ;;  %v100_v18 = vld [vmem:[#allocation5] sm:$0xff]  ;;  %v182_v19 = vld [vmem:[%s316_s2] ss:$0 sm:$0xff]  ;;  %s273_s2 = smov [#allocation7]  }
  0x13   :  { %s161_s28 = sshll.u32 %s273_s2, 4  ;;  %s162_s28 = int_to_ptr.vmem [resolvable:$true] %s161_s28 }
  0x14   :  { %119 = vmatpush.msra.mxu1 %v112_v6 }
  0x16   :  { %120 = vmatpush.msra.mxu1 %v111_v7 }
  0x18   :  { %121 = vmatpush.msra.mxu1 %v110_v8 }
  0x1a   :  { %122 = vmatpush.msra.mxu1 %v109_v9 }
  0x1c   :  { %123 = vmatpush.msra.mxu1 %v108_v10 }
  0x1e   :  { %124 = vmatpush.msra.mxu1 %v107_v11 }
  0x20   :  { %125 = vmatpush.msra.mxu1 %v106_v12 }
  0x22   :  { %126 = vmatpush.msra.mxu1 %v105_v13 }
  0x24   :  { %127 = vmatpush.msra.mxu1 %v104_v14 }
  0x26   :  { %128 = vmatpush.msra.mxu1 %v103_v15 }
  0x28   :  { %129 = vmatpush.msra.mxu1 %v102_v16 }
  0x2a   :  { %130 = vmatpush.msra.mxu1 %v101_v17 }
  0x2c   :  { %131 = vmatpush.msra.mxu1 %v100_v18 }
  0x8d   :  { %v78_v20 = vpop.f32.mrf.mxu0 }
  0x8e   :  { %v79_v21 = vadd.f32 %v182_v19, %v78_v20 }
  0x90   :  { %v175_v22 = vmul.f32 -1.442695, %v79_v21 }
  0x92   :  { %183 = vpow2.f32 %v175_v22 }
  0x98   :  { %v184_v23 = vpop.eup %183 }
  0x99   :  { %v84_v24 = vadd.f32 1.0, %v184_v23 }
  0x9b   :  { %185 = vrcp.f32 %v84_v24  ;;  %v96_v28 = vand.u32 2147483648, %v84_v24  ;;  %v94_v30 = vand.u32 2147483647, %v84_v24  ;;  %vm90_vm2 = vweird.f32 %v84_v24 }
  0x9d   :  { %v97_v32 = vor.u32 1.1754944e-38, %v96_v28  ;;  %vm95_vm4 = vcmp.eq.f32.partialorder %v94_v30, 8.507059e+37 }
  0xa1   :  { %v186_v25 = vpop.eup %185 }
  0xa2   :  { %v86_v26 = vmul.f32 %v186_v25, %v84_v24  ;;  %vm91_vm1 = vweird.f32 %v186_v25 }
  0xa3   :  { %vm92_vm3 = vmor %vm90_vm2, %vm91_vm1 }
  0xa4   :  { %v87_v27 = vsub.f32 1.0, %v86_v26 }
  0xa6   :  { %v88_v29 = vmul.f32 %v186_v25, %v87_v27 }
  0xa8   :  { %v89_v31 = vadd.f32 %v186_v25, %v88_v29 }
  0xaa   :  { %v93_v33 = vsel %vm92_vm3, %v186_v25, %v89_v31 }
  0xab   :  { %v98_v34 = vsel %vm95_vm4, %v97_v32, %v93_v33 }
  0xac   :  { %132 = vmatmul.f32.vlgmr.msra.gmra.mxu1 %v98_v34 }
 0x129   :  { %v133_v35 = vpop.f32.mrf.mxu1 }
 0x12a   :  { %v134_v36 = vadd.f32 -2.0, %v133_v35 }
 0x12c   :  { %v176_v37 = vmul.f32 -1.442695, %v134_v36 }
 0x12e   :  { %187 = vpow2.f32 %v176_v37 }
 0x134   :  { %v188_v38 = vpop.eup %187 }
 0x135   :  { %v139_v39 = vadd.f32 1.0, %v188_v38 }
 0x137   :  { %189 = vrcp.f32 %v139_v39  ;;  %v151_v43 = vand.u32 2147483648, %v139_v39  ;;  %v149_v45 = vand.u32 2147483647, %v139_v39  ;;  %vm145_vm6 = vweird.f32 %v139_v39 }
 0x139   :  { %v152_v47 = vor.u32 1.1754944e-38, %v151_v43  ;;  %vm150_vm8 = vcmp.eq.f32.partialorder %v149_v45, 8.507059e+37 }
 0x13d   :  { %v190_v40 = vpop.eup %189 }
 0x13e   :  { %v141_v41 = vmul.f32 %v190_v40, %v139_v39  ;;  %vm146_vm5 = vweird.f32 %v190_v40 }
 0x13f   :  { %vm147_vm7 = vmor %vm145_vm6, %vm146_vm5 }
 0x140   :  { %v142_v42 = vsub.f32 1.0, %v141_v41 }
 0x142   :  { %v143_v44 = vmul.f32 %v190_v40, %v142_v42 }
 0x144   :  { %v144_v46 = vadd.f32 %v190_v40, %v143_v44 }
 0x146   :  { %v148_v48 = vsel %vm147_vm7, %v190_v40, %v144_v46 }
 0x147   :  { %v153_v49 = vsel %vm150_vm8, %v152_v47, %v148_v48 }
 0x148   :  { %155 = vst [vmem:[#allocation7] sm:$0x3] %v153_v49 }
 0x149   :  { %166 = dma.vmem_to_hbm [thread:$0]  %s162_s28, 32, %s164_s5, [#allocation4]  }
 0x14a   :  { %267 = dma.done.wait [#allocation4], 32  }
 0x14b   :  { %268 = vsyncadd [#allocation4], 4294967264 }
 0x14c   :  { %171 = vsyncpa [#allocation3], 1 }
 0x14d   :  { %172 = vsyncpa [#allocation6], 1 }
 0x14e   :  { %173 = vsyncpa [#allocation4], 1 }

</bundles_post_ra>
